<compile_context>
chip_gen: v7x
topology: tpu7x:2x2x1
jax: 0.10.0
libtpu: 0.0.40
codegen_flags: <defaults>
</compile_context>

<pallas_src>
import jax
import jax.numpy as jnp
from jax.experimental import pallas as pl
from jax.experimental.pallas import tpu as pltpu


def _round_up(x, m):
    return ((x + m - 1) // m) * m


def pitchpred_kernel(x_ref, w1_ref, b1_ref, w2_ref, b2_ref, o_ref):
    # Cast x to bf16 in-kernel (VPU cast is free in this mem-bound regime).
    x = x_ref[...].astype(jnp.bfloat16)
    # fc1: bf16 operands, f32 accumulation on the MXU; bias + ReLU in f32.
    h = jnp.dot(x, w1_ref[...], preferred_element_type=jnp.float32)
    h = jnp.maximum(h + b1_ref[...], 0.0)          # (tb, H) + (1, H) broadcast
    # dropout(p=0) is the identity -> omitted.
    # fc2: cast activations back to bf16 for the MXU, accumulate in f32.
    z = jnp.dot(h.astype(jnp.bfloat16), w2_ref[...],
                preferred_element_type=jnp.float32)
    z = z + b2_ref[...]                            # (tb, O_pad) + (1, O_pad)
    o_ref[...] = jax.nn.sigmoid(z).astype(o_ref.dtype)


def prepare_params(w1, b1, w2, b2):
    """One-time parameter prep (do NOT call per forward):
       * w1/w2 -> bf16 MXU operands
       * w2/b2 lane-padded from (bins+1) to a multiple of 128 with zero columns
       * biases reshaped to (1, N) f32 rows for broadcast in the kernel.
       Weights are stored (in, out), so the kernel computes x @ W (= x @ W_torch.T)."""
    H = w1.shape[1]
    O = w2.shape[1]
    O_pad = _round_up(O, 128)
    w1_b = w1.astype(jnp.bfloat16)
    w2_p = jnp.zeros((H, O_pad), jnp.bfloat16).at[:, :O].set(w2.astype(jnp.bfloat16))
    b1_2d = b1.reshape(1, H).astype(jnp.float32)
    b2_2d = jnp.zeros((1, O_pad), jnp.float32).at[0, :O].set(b2.astype(jnp.float32))
    return (w1_b, b1_2d, w2_p, b2_2d, O)


def _select_batch_tile(B, max_tile):
    # Large tiles (amortize ~0.35 us per-step overhead) but keep >=2 grid steps
    # whenever B allows it, so v7x's two TensorCores both get work on the
    # "parallel" batch axis. Multiple of 16 for native bf16 sublane packing.
    tb = _round_up(pl.cdiv(B, 2), 16)
    tb = min(tb, max_tile)
    return max(tb, 16)


def pitchpred_forward(x, prepared_params, *, max_tile_b=1024):
    """x: (B, input_size) f32; prepared_params from prepare_params().
       Returns (B, bins+1) f32 probabilities."""
    w1_b, b1_2d, w2_p, b2_2d, O = prepared_params
    B, D = x.shape
    H = w1_b.shape[1]
    O_pad = w2_p.shape[1]

    # max_tile_b=1024 keeps double-buffered f32 x tiles (~2 MiB each) + output +
    # weights under ~7 MiB of VMEM -- safe even for v5e's 16 MiB default scoped limit.
    tb = _select_batch_tile(B, max_tile_b)
    grid_b = pl.cdiv(B, tb)          # ragged last tile: extra rows masked on store
    B_eff = grid_b * tb

    cost = pl.CostEstimate(
        flops=2 * B_eff * (D * H + H * O_pad),
        transcendentals=B_eff * O_pad,  # sigmoid exp
        bytes_accessed=(B * D * 4            # x streamed as f32
                        + D * H * 2 + H * 4  # w1 bf16, b1 f32
                        + H * O_pad * 2 + O_pad * 4
                        + B * O_pad * 4),    # output f32
    )

    out = pl.pallas_call(
        pitchpred_kernel,
        out_shape=jax.ShapeDtypeStruct((B, O_pad), jnp.float32),
        grid_spec=pltpu.PrefetchScalarGridSpec(
            num_scalar_prefetch=0,
            grid=(grid_b,),
            in_specs=[
                pl.BlockSpec((tb, D), lambda i: (i, 0)),     # x tile (streamed, f32)
                pl.BlockSpec((D, H), lambda i: (0, 0)),      # w1 (resident, constant block)
                pl.BlockSpec((1, H), lambda i: (0, 0)),      # b1
                pl.BlockSpec((H, O_pad), lambda i: (0, 0)),  # w2 (resident, constant block)
                pl.BlockSpec((1, O_pad), lambda i: (0, 0)),  # b2
            ],
            out_specs=pl.BlockSpec((tb, O_pad), lambda i: (i, 0)),
        ),
        compiler_params=pltpu.CompilerParams(
            dimension_semantics=("parallel",)),   # batch axis shards across TCs on v7x
        cost_estimate=cost,
    )(x, w1_b, b1_2d, w2_p, b2_2d)

    # Strip the zero-padded output columns (module semantics: (B, bins+1) probs).
    # Consumers that tolerate the 27 zero columns can take `out` directly to skip
    # this lane-unaligned slice.
    return out[:, :O]


def init_params(key, input_size=512, hidden_layer=256, bins=100):
    """Deterministic init mimicking nn.Linear's default U(-1/sqrt(fan_in), 1/sqrt(fan_in))."""
    k1, k2, k3, k4 = jax.random.split(key, 4)
    lim1 = 1.0 / (input_size ** 0.5)
    lim2 = 1.0 / (hidden_layer ** 0.5)
    # stored as (in, out) so the kernel computes x @ W directly (== x @ W_torch.T)
    w1 = jax.random.uniform(k1, (input_size, hidden_layer), jnp.float32, -lim1, lim1)
    b1 = jax.random.uniform(k2, (hidden_layer,), jnp.float32, -lim1, lim1)
    w2 = jax.random.uniform(k3, (hidden_layer, bins + 1), jnp.float32, -lim2, lim2)
    b2 = jax.random.uniform(k4, (bins + 1,), jnp.float32, -lim2, lim2)
    return w1, b1, w2, b2


if __name__ == "__main__":
    key = jax.random.PRNGKey(0)
    kx, kp = jax.random.split(key)

    input_size, hidden_layer, bins = 512, 256, 100
    B = 200  # not a multiple of the tile: exercises the ragged cdiv grid + 2 grid steps

    x = jax.random.normal(kx, (B, input_size), jnp.float32)
    w1, b1, w2, b2 = init_params(kp, input_size, hidden_layer, bins)

    # One-time parameter prep (bf16 cast + 101 -> 128 lane padding), reused per call.
    prepared = prepare_params(w1, b1, w2, b2)

    probs = pitchpred_forward(x, prepared)
    probs = jax.block_until_ready(probs)

    # reference check in plain JAX (f32); tolerance relaxed for bf16 matmul operands
    ref = jax.nn.sigmoid(jnp.maximum(x @ w1 + b1, 0.0) @ w2 + b2)
    assert probs.shape == (B, bins + 1)
    assert jnp.all(jnp.isfinite(probs))
    assert jnp.max(jnp.abs(probs - ref)) < 2e-2, float(jnp.max(jnp.abs(probs - ref)))

    print("KERNEL_OK")
</pallas_src>

<mosaic_0001>
module attributes {stable_mosaic.version = 11 : i64} {
  func.func @pitchpred_kernel(%arg0: i32, %arg1: memref<112x512xf32, #tpu.memory_space<vmem>>, %arg2: memref<512x256xbf16, #tpu.memory_space<vmem>>, %arg3: memref<1x256xf32, #tpu.memory_space<vmem>>, %arg4: memref<256x128xbf16, #tpu.memory_space<vmem>>, %arg5: memref<1x128xf32, #tpu.memory_space<vmem>>, %arg6: memref<112x128xf32, #tpu.memory_space<vmem>>) attributes {dimension_semantics = [#tpu.dimension_semantics<parallel>], iteration_bounds = array<i64: 2>, scalar_prefetch = 0 : i64, scratch_operands = 0 : i64, tpu.core_type = #tpu.core_type<tc>, window_params = [{transform_indices = @transform_0, window_bounds = array<i64: 112, 512>}, {pipeline_mode = #tpu.pipeline_mode<synchronous>, transform_indices = @transform_1, window_bounds = array<i64: 512, 256>}, {pipeline_mode = #tpu.pipeline_mode<synchronous>, transform_indices = @transform_2, window_bounds = array<i64: 1, 256>}, {pipeline_mode = #tpu.pipeline_mode<synchronous>, transform_indices = @transform_3, window_bounds = array<i64: 256, 128>}, {pipeline_mode = #tpu.pipeline_mode<synchronous>, transform_indices = @transform_4, window_bounds = array<i64: 1, 128>}, {transform_indices = @transform_5, window_bounds = array<i64: 112, 128>}]} {
    %c0 = arith.constant 0 : index
    %c0_0 = arith.constant 0 : index
    %0 = vector.load %arg1[%c0, %c0_0] : memref<112x512xf32, #tpu.memory_space<vmem>>, vector<112x512xf32>
    %1 = arith.truncf %0 : vector<112x512xf32> to vector<112x512xbf16>
    %c0_1 = arith.constant 0 : index
    %c0_2 = arith.constant 0 : index
    %2 = vector.load %arg2[%c0_1, %c0_2] : memref<512x256xbf16, #tpu.memory_space<vmem>>, vector<512x256xbf16>
    %cst = arith.constant dense<0.000000e+00> : vector<112x256xf32>
    %3 = tpu.matmul %1, %2, %cst {dimension_numbers = #tpu.dot_dimension_numbers<[1], [0], [0], [1], [0, 0, 1, 1], [], []>} : vector<112x512xbf16>, vector<512x256xbf16>, vector<112x256xf32> -> vector<112x256xf32>
    %c0_3 = arith.constant 0 : index
    %c0_4 = arith.constant 0 : index
    %4 = vector.load %arg3[%c0_3, %c0_4] : memref<1x256xf32, #tpu.memory_space<vmem>>, vector<1x256xf32>
    %5 = vector.broadcast %4 : vector<1x256xf32> to vector<112x256xf32>
    %6 = arith.addf %3, %5 : vector<112x256xf32>
    %cst_5 = arith.constant 0.000000e+00 : f32
    %7 = vector.broadcast %cst_5 : f32 to vector<112x256xf32>
    %8 = arith.maximumf %6, %7 : vector<112x256xf32>
    %9 = arith.truncf %8 : vector<112x256xf32> to vector<112x256xbf16>
    %c0_6 = arith.constant 0 : index
    %c0_7 = arith.constant 0 : index
    %10 = vector.load %arg4[%c0_6, %c0_7] : memref<256x128xbf16, #tpu.memory_space<vmem>>, vector<256x128xbf16>
    %cst_8 = arith.constant dense<0.000000e+00> : vector<112x128xf32>
    %11 = tpu.matmul %9, %10, %cst_8 {dimension_numbers = #tpu.dot_dimension_numbers<[1], [0], [0], [1], [0, 0, 1, 1], [], []>} : vector<112x256xbf16>, vector<256x128xbf16>, vector<112x128xf32> -> vector<112x128xf32>
    %c0_9 = arith.constant 0 : index
    %c0_10 = arith.constant 0 : index
    %12 = vector.load %arg5[%c0_9, %c0_10] : memref<1x128xf32, #tpu.memory_space<vmem>>, vector<1x128xf32>
    %13 = vector.broadcast %12 : vector<1x128xf32> to vector<112x128xf32>
    %14 = arith.addf %11, %13 : vector<112x128xf32>
    %15 = arith.negf %14 : vector<112x128xf32>
    %16 = math.exp %15 : vector<112x128xf32>
    %cst_11 = arith.constant 1.000000e+00 : f32
    %17 = vector.broadcast %cst_11 : f32 to vector<112x128xf32>
    %18 = arith.addf %17, %16 : vector<112x128xf32>
    %19 = arith.divf %17, %18 : vector<112x128xf32>
    %c0_12 = arith.constant 0 : index
    %c0_13 = arith.constant 0 : index
    %20 = vector.load %arg6[%c0_12, %c0_13] : memref<112x128xf32, #tpu.memory_space<vmem>>, vector<112x128xf32>
    tpu.vector_store %arg6[%c0_12, %c0_13], %19 {strides = array<i32>} : memref<112x128xf32, #tpu.memory_space<vmem>>, vector<112x128xf32>,
    return
  }
  func.func @transform_0(%arg0: i32) -> (i32, i32) {
    %c0_i32 = arith.constant 0 : i32
    %c0_i32_0 = arith.constant 0 : i32
    return %arg0, %c0_i32 : i32, i32
  }
  func.func @transform_1(%arg0: i32) -> (i32, i32) {
    %c0_i32 = arith.constant 0 : i32
    %c0_i32_0 = arith.constant 0 : i32
    %c0_i32_1 = arith.constant 0 : i32
    return %c0_i32, %c0_i32_0 : i32, i32
  }
  func.func @transform_2(%arg0: i32) -> (i32, i32) {
    %c0_i32 = arith.constant 0 : i32
    %c0_i32_0 = arith.constant 0 : i32
    %c0_i32_1 = arith.constant 0 : i32
    return %c0_i32, %c0_i32_0 : i32, i32
  }
  func.func @transform_3(%arg0: i32) -> (i32, i32) {
    %c0_i32 = arith.constant 0 : i32
    %c0_i32_0 = arith.constant 0 : i32
    %c0_i32_1 = arith.constant 0 : i32
    return %c0_i32, %c0_i32_0 : i32, i32
  }
  func.func @transform_4(%arg0: i32) -> (i32, i32) {
    %c0_i32 = arith.constant 0 : i32
    %c0_i32_0 = arith.constant 0 : i32
    %c0_i32_1 = arith.constant 0 : i32
    return %c0_i32, %c0_i32_0 : i32, i32
  }
  func.func @transform_5(%arg0: i32) -> (i32, i32) {
    %c0_i32 = arith.constant 0 : i32
    %c0_i32_0 = arith.constant 0 : i32
    return %arg0, %c0_i32 : i32, i32
  }
}

</mosaic_0001>

<bundles_post_ra>
// kernel: tpu_custom_call.1
= control target key start
LH: loop header
LB: loop body
LE: loop exit
PB: predicated region body
PF: predicated region fallthrough
CT: control target
= control target key end

     0   :  { %10 = vsyncpa [#allocation3], 0  ;;  %s2680_s0 = inlined_call_operand.hbm [shape: f32[200,512], index: 0, kind: input, shape index: {}]   ;;  %s2681_s1 = inlined_call_operand.hbm [shape: bf16[512,256], index: 1, kind: input, shape index: {}]   ;;  %s2682_s2 = inlined_call_operand.vmem [shape: f32[1,256], index: 2, kind: input, shape index: {}]   ;;  %s2683_s3 = inlined_call_operand.hbm [shape: bf16[256,128], index: 3, kind: input, shape index: {}]   ;;  %s2684_s4 = inlined_call_operand.vmem [shape: f32[1,128], index: 4, kind: input, shape index: {}]   ;;  %s2685_s5 = inlined_call_operand.hbm [shape: f32[200,128], index: 5, kind: output, shape index: {}]  }
   0x1   :  { %12 = vsyncpa [#allocation3 + $0x1], 0 }
   0x2   :  { %13 = vsyncpa [#allocation6], 0 }
   0x3   :  { %14 = vsyncpa [#allocation4], 0 }
   0x4   :  { %16 = vsyncpa [#allocation4 + $0x1], 0  ;;  %s2159_s18 = smov 0   ;;  %s2161_s19 = smov 0  }
   0x5   :  { %s2163_s20 = smov 0   ;;  %s2165_s21 = smov 0  }
   0x6 LB: > { %s2180_s22 = sadd.s32 4294967295, %s2115_s21   ;;  %s1454_s23 = sadd.s32 4294967294, %s2115_s21   ;;  %s2115_s21 = sphi %s2165_s21, %s2707_s21   ;;  %s2111_s20 = sphi %s2163_s20, %s2706_s20   ;;  %s2107_s19 = sphi %s2161_s19, %s2705_s19   ;;  %s2103_s18 = sphi %s2159_s18, %s2704_s18  }
   0x7   : > { %s2184_s24 = sadd.s32 1, %s2115_s21   ;;  %s29_s25 = sadd.s32 1, %s2111_s20 }
   0x8   : > { %s26_s26 = ssub.s32 %s2115_s21, %s2184_s24  ;;  %p36_p0 = scmp.ne.s32.totalorder %s2111_s20, %s2107_s19 }
   0x9   : > { %p27_p1 = scmp.eq.s32.totalorder %s26_s26, 0  ;;  %p37_p2 = scmp.eq.s32.totalorder %s2115_s21, 0 }
   0xa   : > { %p42_p3 = scmp.ne.s32.totalorder %s2107_s19, %s2103_s18  ;;  %p2686_p4 = scmp.eq.s32.totalorder %s2180_s22, 0 }
   0xb   : > { %s2196_s27 = scalar_select %p27_p1, %s2111_s20, %s29_s25  }
   0xc   : > { %p2198_p5 = por %p37_p2, %p36_p0  ;;  %p2204_p6 = por %p2686_p4, %p42_p3 }
   0xd   : > { %2689 = sst [smem:[#allocation12_spill]] %s2196_s27  ;;  %p150_p7 = scmp.eq.s32.totalorder %s2180_s22, 1 }
   0xe   : > { %s2690_s28 = scalar_select %p2198_p5, 1, 0 }
   0xf   : > { %s2691_s29 = scalar_select %p2204_p6, 1, 0 }
  0x10   : > { %p156_p8 = scmp.eq.s32.totalorder %s1454_s23, 1  ;;  %p1455_p9 = scmp.ge.s32.totalorder %s2115_s21, 1 }
  0x11   : > { %p163_p10 = scmp.lt.s32.totalorder %s2115_s21, 3  ;;  %p2211_p11 = por %p150_p7, %p36_p0 }
  0x12   : > { %p2215_p12 = por %p156_p8, %p42_p3  ;;  %s2117_s8 = smov [#allocation5]  }
  0x13   : > { %s2692_s30 = scalar_select %p2211_p11, 1, 0 }
  0x14   : > { %s2693_s6 = scalar_select %p2215_p12, 1, 0 }
  0x15   : > { %p2219_p13 = pnand %p1455_p9, %p163_p10  ;;  %s175_s9 = sshll.u32 %s2117_s8, 4  ;;  %s176_s9 = int_to_ptr.vmem [resolvable:$true] %s175_s9 }
  0x16   : > { %s2118_s11 = smov [#allocation7]   ;;  %s1961_s15 = scalar_lea.hbm %s2681_s1, 8192 }
  0x17   : > { %s2694_s7 = scalar_select %p2219_p13, 1, 0 }
  0x18   : > { %p1735_p1 = pneg %p2219_p13  ;;  %s191_s12 = sshll.u32 %s2118_s11, 4  ;;  %s2231_s12 = int_to_ptr.vmem [resolvable:$true] %s191_s12 }
  0x19   : > { %p1962_p0 = scmp.ne.s32.totalorder %s2681_s1, %s1961_s15  ;;  %p1968_p9 = scmp.lt.u32.totalorder %s1961_s15, %s2681_s1 }
  0x1a   : > { %p2227_p2 = pnand %p1735_p1, %p2686_p4 }
  0x1c   : > { %p1963_p3 = pneg %p2227_p2 }
  0x1e   : > { %p1964_p7 = pnand %p1963_p3, %p1962_p0 }
  0x20   : > { %p1965_p8 = pneg %p1964_p7 }
  0x22   : > { %p1970_p10 = pnand %p1968_p9, %p1965_p8 }
  0x24   : > { %1973 = shalt.err (!%p1970_p10)
}
  0x25   : > { %s1974_s26 = scalar_lea.vmem %s176_s9, 8192  ;;  %p1982_p11 = scmp.lt.s32.totalorder %s176_s9, %s176_s9 }
  0x26   : > { %p1975_p1 = scmp.ne.s32.totalorder %s176_s9, %s1974_s26  ;;  %p1983_p6 = scmp.lt.s32.totalorder %s1974_s26, %s1974_s26 }
  0x28   : > { %p1977_p4 = pnand %p1975_p1, %p1963_p3  ;;  %p1984_p13 = por %p1983_p6, %p1982_p11 }
  0x2a   : > { %p1978_p12 = pneg %p1977_p4 }
  0x2c   : > { %p1985_p5 = pnand %p1984_p13, %p1978_p12 }
  0x2e   : > { %1988 = shalt.err (!%p1985_p5)
}
  0x2f   : > { %s2119_s8 = smov 128   ;;  %s2120_s11 = smov 8  }
  0x30   : > { %1738 = dma.hbm_to_vmem [thread:$0]  (!%p2227_p2), %s2681_s1, 8192, %s176_s9, [#allocation6], %s2119_s8, %s2119_s8, %s2120_s11  }
  0x31   : > { %s1989_s17 = scalar_lea.hbm %s2683_s3, 2048 }
  0x32   : > { %p1990_p4 = scmp.ne.s32.totalorder %s2683_s3, %s1989_s17  ;;  %p1996_p11 = scmp.lt.u32.totalorder %s1989_s17, %s2683_s3 }
  0x34   : > { %p1992_p5 = pnand %p1990_p4, %p1963_p3 }
  0x36   : > { %p1993_p6 = pneg %p1992_p5 }
  0x38   : > { %p1998_p12 = pnand %p1996_p11, %p1993_p6 }
  0x3a   : > { %2001 = shalt.err (!%p1998_p12)
}
  0x3b   : > { %s2002_s9 = scalar_lea.vmem %s2231_s12, 2048  ;;  %p2010_p8 = scmp.lt.s32.totalorder %s2231_s12, %s2231_s12 }
  0x3c   : > { %p2003_p13 = scmp.ne.s32.totalorder %s2231_s12, %s2002_s9  ;;  %p2011_p9 = scmp.lt.s32.totalorder %s2002_s9, %s2002_s9 }
  0x3e   : > { %p2005_p0 = pnand %p2003_p13, %p1963_p3  ;;  %p2012_p10 = por %p2011_p9, %p2010_p8 }
  0x40   : > { %p2006_p7 = pneg %p2005_p0 }
  0x42   : > { %p2013_p1 = pnand %p2012_p10, %p2006_p7 }
  0x44   : > { %2016 = shalt.err (!%p2013_p1)
}
  0x45   : > { %s2121_s27 = smov 64   ;;  %s2122_s8 = smov 4  }
  0x46   : > { %1741 = dma.hbm_to_vmem [thread:$0]  (!%p2227_p2), %s2683_s3, 2048, %s2231_s12, [#allocation6], %s2121_s27, %s2121_s27, %s2122_s8  }
  0x47   : > { %p1458_p4 = scmp.ge.s32.totalorder %s2115_s21, 2 }
  0x48   : > { %p2696_p3 = scmp.ne.s32.totalorder (!%p1458_p4), %s2690_s28, 0 }
  0x49   : > { %204 = sbr.rel (%p1458_p4) target bundleno = 115 (0x73), region = 32 }
  0x50   : > { %207 = sbr.rel (!%p2696_p3) target bundleno = 115 (0x73), region = 36  ;;  %s208_s14 = sand.u32 (%p2696_p3), 1, %s2111_s20  }
  0x51   : > { %s213_s15 = smul.u32 (%p2696_p3), 14, %s2115_s21  ;;  %s2290_s23 = scalar_lea.sflag (%p2696_p3), [#allocation3], %s208_s14 }
  0x52   : > { %s1722_s16 = smul.u32 (%p2696_p3), 448, %s208_s14 }
  0x53   : > { %s214_s17 = ssub.s32 (%p2696_p3), 25, %s213_s15 }
  0x54   : > { %p215_p5 = scmp.lt.s32.totalorder (%p2696_p3), %s214_s17, 14  ;;  %s212_s25 = scalar_lea.vmem (%p2696_p3), [#allocation2], %s1722_s16 }
  0x57   : > { %s2709_s17 = smov (!%p215_p5, %s214_s17), 14 }
  0x58   : > { %s2287_s10 = sshll.u32 %s2709_s17, 9 }
  0x59   : > { %s220_s12 = ssub.s32 7168, %s2287_s10 }
  0x5a   : > { %221 = vsyncadd %s2290_s23, %s220_s12  ;;  %p1461_p2 = scmp.ne.s32.totalorder %s2287_s10, 0  ;;  %s1575_s28 = smul.u32 7168, %s2115_s21 }
  0x5b   : > { %s227_s26 = sshll.u32 %s212_s25, 4  ;;  %s2021_s15 = scalar_lea.hbm %s2680_s0, 12800  ;;  %s2300_s26 = int_to_ptr.vmem [resolvable:$true] %s227_s26 }
  0x5c   : > { %s2298_s8 = scalar_lea.hbm %s2680_s0, %s1575_s28 }
  0x5d   : > { %s2017_s11 = scalar_lea.hbm %s2298_s8, %s2287_s10  ;;  %p2022_p13 = scmp.lt.u32.totalorder %s2298_s8, %s2680_s0 }
  0x5e   : > { %p2018_p6 = scmp.ne.s32.totalorder %s2298_s8, %s2017_s11  ;;  %p2023_p0 = scmp.lt.u32.totalorder %s2021_s15, %s2017_s11 }
  0x5f   : > { %p2025_p8 = scmp.lt.u32.totalorder %s2017_s11, %s2298_s8 }
  0x60   : > { %p2019_p11 = pnand %p2018_p6, %p1461_p2  ;;  %p2024_p7 = por %p2023_p0, %p2022_p13 }
  0x62   : > { %p2020_p12 = pneg %p2019_p11  ;;  %p2026_p9 = por %p2025_p8, %p2024_p7 }
  0x64   : > { %p2027_p10 = pnand %p2026_p9, %p2020_p12 }
  0x66   : > { %2030 = shalt.err (!%p2027_p10)
}
  0x67   : > { %s2031_s12 = scalar_lea.vmem %s2300_s26, %s2287_s10  ;;  %s2123_s25 = smov [#allocation2]  }
  0x68   : > { %p2032_p1 = scmp.ne.s32.totalorder %s2300_s26, %s2031_s12  ;;  %s2035_s28 = sshll.u32 %s2123_s25, 4  ;;  %s2036_s28 = int_to_ptr.vmem [resolvable:$false] %s2035_s28 }
  0x69   : > { %s2037_s9 = scalar_lea.vmem %s2036_s28, 14336  ;;  %p2038_p6 = scmp.lt.s32.totalorder %s2300_s26, %s2036_s28 }
  0x6a   : > { %p2033_p3 = pnand %p2032_p1, %p1461_p2  ;;  %p2039_p11 = scmp.lt.s32.totalorder %s2037_s9, %s2031_s12 }
  0x6c   : > { %p2034_p5 = pneg %p2033_p3  ;;  %p2040_p13 = por %p2039_p11, %p2038_p6 }
  0x6e   : > { %p2041_p0 = pnand %p2040_p13, %p2034_p5 }
  0x70   : > { %2044 = shalt.err (!%p2041_p0)
}
  0x71   : > { %s2124_s27 = smov 512   ;;  %s2125_s11 = smov 32  }
  0x72   : > { %233 = dma.hbm_to_vmem [thread:$0]  (%p1461_p2), %s2298_s8, %s2287_s10, %s2300_s26, %s2290_s23, %s2124_s27, %s2124_s27, %s2125_s11  }
  0x73 PF: > { %p2697_p12 = scmp.ne.s32.totalorder %s2694_s7, 0 }
  0x74   : > { %s2330_s13 = sand.u32 (!%p2697_p12), 1, %s2107_s19   ;;  %p2698_p7 = scmp.ne.s32.totalorder (!%p2697_p12), %s2691_s29, 0 }
  0x75   : > { %239 = sbr.rel (%p2697_p12) target bundleno = 801 (0x321), region = 40  ;;  %s242_s15 = scalar_lea.sflag (!%p2697_p12), [#allocation3], %s2330_s13 }
  0x76   : > { %s1723_s14 = smul.u32 (!%p2697_p12), 448, %s2330_s13 }
  0x78   : > { %s2334_s16 = scalar_lea.vmem (!%p2697_p12), [#allocation2], %s1723_s14 }
  0x7c   : > { %2090 = dma.done.wait (%p2698_p7), %s242_s15, 7168  }
  0x7d   : > { %2092 = vsyncadd (%p2698_p7), %s242_s15, 4294960128  ;;  %p2699_p2 = scmp.eq.s32.totalorder %s2180_s22, 0 }
  0x7f   : > { %2094 = dma.done.wait (%p2699_p2), [#allocation6], 10240   ;;  %p2700_p8 = pmov %p2699_p2 }
  0x80   : > { %v1793_v0 = vld [vmem:[#allocation5 + $0x4] ss:$8 sps:$4 sm:$0xff]   ;;  %v1795_v1 = vld [vmem:[#allocation5] ss:$8 sps:$4 sm:$0xff]   ;;  %v1796_v2 = vld [vmem:[#allocation5 + $0x14] ss:$8 sps:$4 sm:$0xff]  }
  0x81   : > { %2096 = vsyncadd (%p2700_p8), [#allocation6], 4294957056  ;;  %772 = vmatprep.subr.bf16.mxu0 %v1793_v0  ;;  %v1798_v3 = vld [vmem:[#allocation5 + $0x10] ss:$8 sps:$4 sm:$0xff]   ;;  %v1799_v4 = vld [vmem:[#allocation5 + $0x24] ss:$8 sps:$4 sm:$0xff]  }
  0x82   : > { %773 = vmatpush1.bf16.msra.mxu0 %v1795_v1  ;;  %v1801_v5 = vld [vmem:[#allocation5 + $0x20] ss:$8 sps:$4 sm:$0xff]   ;;  %v1802_v6 = vld [vmem:[#allocation5 + $0x34] ss:$8 sps:$4 sm:$0xff]   ;;  %v1804_v7 = vld [vmem:[#allocation5 + $0x30] ss:$8 sps:$4 sm:$0xff]  }
  0x83   : > { %774 = vmatprep.subr.bf16.mxu0 %v1796_v2  ;;  %v2344_v8 = vld [vmem:[#allocation5 + $0x104] ss:$8 sps:$4 sm:$0xff]   ;;  %v2346_v10 = vld [vmem:[#allocation5 + $0x100] ss:$8 sps:$4 sm:$0xff]   ;;  %v2350_v11 = vld [vmem:[#allocation5 + $0x114] ss:$8 sps:$4 sm:$0xff]  }
  0x84   : > { %v1805_v9 = vld [vmem:[#allocation5 + $0x44] ss:$8 sps:$4 sm:$0xff]   ;;  %1634 = vmatprep.subr.bf16.mxu1 %v2344_v8  ;;  %v1807_v12 = vld [vmem:[#allocation5 + $0x40] ss:$8 sps:$4 sm:$0xff]   ;;  %v1808_v13 = vld [vmem:[#allocation5 + $0x54] ss:$8 sps:$4 sm:$0xff]  }
  0x85   : > { %1650 = vmatpush1.bf16.msra.mxu1 %v2346_v10  ;;  %v2352_v14 = vld [vmem:[#allocation5 + $0x110] ss:$8 sps:$4 sm:$0xff]   ;;  %v2355_v15 = vld [vmem:[#allocation5 + $0x124] ss:$8 sps:$4 sm:$0xff]   ;;  %v2358_v17 = vld [vmem:[#allocation5 + $0x120] ss:$8 sps:$4 sm:$0xff]  }
  0x86   : > { %775 = vmatpush1.bf16.msra.mxu0 %v1798_v3  ;;  %1635 = vmatprep.subr.bf16.mxu1 %v2350_v11  ;;  %v1810_v16 = vld [vmem:[#allocation5 + $0x50] ss:$8 sps:$4 sm:$0xff]   ;;  %v2361_v18 = vld [vmem:[#allocation5 + $0x134] ss:$8 sps:$4 sm:$0xff]   ;;  %v1811_v19 = vld [vmem:[#allocation5 + $0x64] ss:$8 sps:$4 sm:$0xff]  }
  0x87   : > { %776 = vmatprep.subr.bf16.mxu0 %v1799_v4  ;;  %v2364_v20 = vld [vmem:[#allocation5 + $0x130] ss:$8 sps:$4 sm:$0xff]   ;;  %v1813_v21 = vld [vmem:[#allocation5 + $0x60] ss:$8 sps:$4 sm:$0xff]   ;;  %v2367_v22 = vld [vmem:[#allocation5 + $0x144] ss:$8 sps:$4 sm:$0xff]  }
  0x88   : > { %v1814_v23 = vld [vmem:[#allocation5 + $0x74] ss:$8 sps:$4 sm:$0xff]   ;;  %v1816_v24 = vld [vmem:[#allocation5 + $0x70] ss:$8 sps:$4 sm:$0xff]   ;;  %v2370_v25 = vld [vmem:[#allocation5 + $0x140] ss:$8 sps:$4 sm:$0xff]  }
  0x89   : > { %1651 = vmatpush1.bf16.msra.mxu1 %v2352_v14  ;;  %v2373_v26 = vld [vmem:[#allocation5 + $0x154] ss:$8 sps:$4 sm:$0xff]   ;;  %v1819_v27 = vld [vmem:[#allocation5 + $0x84] ss:$8 sps:$4 sm:$0xff]   ;;  %v2376_v28 = vld [vmem:[#allocation5 + $0x150] ss:$8 sps:$4 sm:$0xff]  }
  0x8a   : > { %777 = vmatpush1.bf16.msra.mxu0 %v1801_v5  ;;  %1636 = vmatprep.subr.bf16.mxu1 %v2355_v15  ;;  %v1822_v29 = vld [vmem:[#allocation5 + $0x80] ss:$8 sps:$4 sm:$0xff]   ;;  %v2379_v30 = vld [vmem:[#allocation5 + $0x164] ss:$8 sps:$4 sm:$0xff]   ;;  %v1825_v31 = vld [vmem:[#allocation5 + $0x94] ss:$8 sps:$4 sm:$0xff]  }
  0x8b   : > { %778 = vmatprep.subr.bf16.mxu0 %v1802_v6  ;;  %v293_v32 = vld [vmem:[%s2334_s16 + $0x8] sm:$0xff]  ;;  %v1828_v36 = vld [vmem:[#allocation5 + $0x90] ss:$8 sps:$4 sm:$0xff]   ;;  %v2387_v37 = vld [vmem:[#allocation5 + $0x174] ss:$8 sps:$4 sm:$0xff]   ;;  %s1724_s26 = smul.u32 112, %s2330_s13 }
  0x8c   : > { %v297_v33 = vld [vmem:[%s2334_s16 + $0x28] sm:$0xff]  ;;  %v2390_v39 = vld [vmem:[#allocation5 + $0x170] ss:$8 sps:$4 sm:$0xff]   ;;  %v1837_v42 = vld [vmem:[#allocation5 + $0xb4] ss:$8 sps:$4 sm:$0xff]   ;;  %s1343_s17 = scalar_lea.sflag [#allocation4], %s2330_s13 }
  0x8d   : > { %1652 = vmatpush1.bf16.msra.mxu1 %v2358_v17  ;;  %v2384_v34 = vld [vmem:[#allocation5 + $0x160] ss:$8 sps:$4 sm:$0xff]   ;;  %v349_v35 = vpack.c.bf16 %v297_v33, %v293_v32  ;;  %v1831_v38 = vld [vmem:[#allocation5 + $0xa4] ss:$8 sps:$4 sm:$0xff]   ;;  %v1840_v44 = vld [vmem:[#allocation5 + $0xb0] ss:$8 sps:$4 sm:$0xff]  }
  0x8e   : > { %779 = vmatpush1.bf16.msra.mxu0 %v1804_v7  ;;  %1637 = vmatprep.subr.bf16.mxu1 %v2361_v18  ;;  %v1834_v40 = vld [vmem:[#allocation5 + $0xa0] ss:$8 sps:$4 sm:$0xff]   ;;  %v2393_v41 = vld [vmem:[#allocation5 + $0x184] ss:$8 sps:$4 sm:$0xff]   ;;  %v2399_v45 = vld [vmem:[#allocation5 + $0x194] ss:$8 sps:$4 sm:$0xff]  }
  0x8f   : > { %780 = vmatprep.subr.bf16.mxu0 %v1805_v9  ;;  %804 = vmatprep.mubr.bf16.mxu0 %v349_v35  ;;  %v2396_v43 = vld [vmem:[#allocation5 + $0x180] ss:$8 sps:$4 sm:$0xff]   ;;  %v1843_v46 = vld [vmem:[#allocation5 + $0xc4] ss:$8 sps:$4 sm:$0xff]   ;;  %v2402_v47 = vld [vmem:[#allocation5 + $0x190] ss:$8 sps:$4 sm:$0xff]  }
  0x90   : > { %v1846_v48 = vld [vmem:[#allocation5 + $0xc0] ss:$8 sps:$4 sm:$0xff]   ;;  %v2405_v49 = vld [vmem:[#allocation5 + $0x1a4] ss:$8 sps:$4 sm:$0xff]   ;;  %v1849_v50 = vld [vmem:[#allocation5 + $0xd4] ss:$8 sps:$4 sm:$0xff]  }
  0x91   : > { %1653 = vmatpush1.bf16.msra.mxu1 %v2364_v20  ;;  %v319_v51 = vld [vmem:[%s2334_s16 + $0xd8] sm:$0xff]  ;;  %v2410_v54 = vld [vmem:[#allocation5 + $0x1a0] ss:$8 sps:$4 sm:$0xff]   ;;  %v1855_v57 = vld [vmem:[#allocation5 + $0xe4] ss:$8 sps:$4 sm:$0xff]   ;;  %s2595_s8 = scalar_lea.vmem [#allocation8], %s1724_s26 }
  0x92   : > { %781 = vmatpush1.bf16.msra.mxu0 %v1807_v12  ;;  %1638 = vmatprep.subr.bf16.mxu1 %v2367_v22  ;;  %v323_v52 = vld [vmem:[%s2334_s16 + $0xf8] sm:$0xff]  ;;  %v1858_v59 = vld [vmem:[#allocation5 + $0xe0] ss:$8 sps:$4 sm:$0xff]   ;;  %v2419_v60 = vld [vmem:[#allocation5 + $0x1c4] ss:$8 sps:$4 sm:$0xff]   ;;  %p2701_p9 = scmp.ne.s32.totalorder %s2692_s30, 0 }
  0x93   : > { %782 = vmatprep.subr.bf16.mxu0 %v1808_v13  ;;  %v363_v53 = vpack.c.bf16 %v323_v52, %v319_v51  ;;  %v1852_v55 = vld [vmem:[#allocation5 + $0xd0] ss:$8 sps:$4 sm:$0xff]   ;;  %v2413_v56 = vld [vmem:[#allocation5 + $0x1b4] ss:$8 sps:$4 sm:$0xff]   ;;  %v2422_v63 = vld [vmem:[#allocation5 + $0x1c0] ss:$8 sps:$4 sm:$0xff]  }
  0x94   : > { %v2416_v58 = vld [vmem:[#allocation5 + $0x1b0] ss:$8 sps:$4 sm:$0xff]   ;;  %v1861_v61 = vld [vmem:[#allocation5 + $0xf4] ss:$8 sps:$4 sm:$0xff]   ;;  %v292_v0 = vld [vmem:[%s2334_s16] sm:$0xff]  ;;  %s1350_s12 = smul.u32 (%p2701_p9), 14, %s2180_s22 }
  0x95   : > { %1654 = vmatpush1.bf16.msra.mxu1 %v2370_v25  ;;  %937 = vmatprep.mubr.bf16.mxu1 %v363_v53  ;;  %v1864_v62 = vld [vmem:[#allocation5 + $0xf0] ss:$8 sps:$4 sm:$0xff]   ;;  %v296_v1 = vld [vmem:[%s2334_s16 + $0x20] sm:$0xff]  ;;  %v2427_v2 = vld [vmem:[#allocation5 + $0x1d4] ss:$8 sps:$4 sm:$0xff]  }
  0x96   : > { %783 = vmatpush1.bf16.msra.mxu0 %v1810_v16  ;;  %1639 = vmatprep.subr.bf16.mxu1 %v2373_v26  ;;  %v301_v3 = vld [vmem:[%s2334_s16 + $0x48] sm:$0xff]  ;;  %v2431_v5 = vld [vmem:[#allocation5 + $0x1d0] ss:$8 sps:$4 sm:$0xff]   ;;  %v348_v6 = vpack.c.bf16 %v296_v1, %v292_v0  ;;  %v300_v13 = vld [vmem:[%s2334_s16 + $0x40] sm:$0xff]  ;;  %s1351_s25 = ssub.s32 (%p2701_p9), 25, %s1350_s12 }
  0x97   : > { %784 = vmatprep.subr.bf16.mxu0 %v1811_v19  ;;  %v305_v4 = vld [vmem:[%s2334_s16 + $0x68] sm:$0xff]  ;;  %v304_v16 = vld [vmem:[%s2334_s16 + $0x60] sm:$0xff]  ;;  %v2442_v19 = vld [vmem:[#allocation5 + $0x1f4] ss:$8 sps:$4 sm:$0xff]   ;;  %p1352_p10 = scmp.lt.s32.totalorder (%p2701_p9), %s1351_s25, 14 }
  0x98   : > { %v2434_v7 = vld [vmem:[#allocation5 + $0x1e4] ss:$8 sps:$4 sm:$0xff]   ;;  %v353_v9 = vpack.c.bf16 %v305_v4, %v301_v3  ;;  %v2438_v12 = vld [vmem:[#allocation5 + $0x1e0] ss:$8 sps:$4 sm:$0xff]   ;;  %v352_v32 = vpack.c.bf16 %v304_v16, %v300_v13  ;;  %v346_v4 = vld [vmem:[%s2334_s16 + $0x1b0] sm:$0xff] }
  0x99   : > { %1655 = vmatpush1.bf16.msra.mxu1 %v2376_v28  ;;  %v308_v35 = vld [vmem:[%s2334_s16 + $0x80] sm:$0xff]  ;;  %v329_v52 = vld [vmem:[%s2334_s16 + $0x128] sm:$0xff] }
  0x9a   : > { %785 = vmatpush1.bf16.msra.mxu0 %v1813_v21  ;;  %1640 = vmatprep.subr.bf16.mxu1 %v2379_v30  ;;  %v309_v21 = vld [vmem:[%s2334_s16 + $0x88] sm:$0xff]  ;;  %v320_v51 = vld [vmem:[%s2334_s16 + $0xe0] sm:$0xff] }
  0x9b   : > { %786 = vmatprep.subr.bf16.mxu0 %v1814_v23  ;;  %v313_v23 = vld [vmem:[%s2334_s16 + $0xa8] sm:$0xff]  ;;  %v328_v0 = vld [vmem:[%s2334_s16 + $0x120] sm:$0xff] }
  0x9c   : > { %v337_v1 = vld [vmem:[%s2334_s16 + $0x168] sm:$0xff] }
  0x9d   : > { %1656 = vmatpush1.bf16.msra.mxu1 %v2384_v34  ;;  %v341_v13 = vld [vmem:[%s2334_s16 + $0x188] sm:$0xff] }
  0x9e   : > { %787 = vmatpush1.bf16.msra.mxu0 %v1816_v24  ;;  %1641 = vmatprep.subr.bf16.mxu1 %v2387_v37  ;;  %v318_v24 = vld [vmem:[%s2334_s16 + $0xd0] sm:$0xff]  ;;  %v345_v16 = vld [vmem:[%s2334_s16 + $0x1a8] sm:$0xff] }
  0x9f   : > { %788 = vmatprep.subr.bf16.mxu0 %v1819_v27  ;;  %v322_v27 = vld [vmem:[%s2334_s16 + $0xf0] sm:$0xff] }
  0xa1   : > { %1657 = vmatpush1.bf16.msra.mxu1 %v2390_v39 }
  0xa2   : > { %789 = vmatpush1.bf16.msra.mxu0 %v1822_v29  ;;  %1642 = vmatprep.subr.bf16.mxu1 %v2393_v41  ;;  %v327_v29 = vld [vmem:[%s2334_s16 + $0x118] sm:$0xff] }
  0xa3   : > { %790 = vmatprep.subr.bf16.mxu0 %v1825_v31  ;;  %v331_v31 = vld [vmem:[%s2334_s16 + $0x138] sm:$0xff] }
  0xa4   : > { %v367_v33 = vpack.c.bf16 %v331_v31, %v327_v29  ;;  %v310_v31 = vld [vmem:[%s2334_s16 + $0x90] sm:$0xff] }
  0xa5   : > { %1658 = vmatpush1.bf16.msra.mxu1 %v2396_v43 }
  0xa6   : > { %791 = vmatpush1.bf16.msra.mxu0 %v1828_v36  ;;  %1643 = vmatprep.subr.bf16.mxu1 %v2399_v45  ;;  %v312_v36 = vld [vmem:[%s2334_s16 + $0xa0] sm:$0xff] }
  0xa7   : > { %792 = vmatprep.subr.bf16.mxu0 %v1831_v38  ;;  %v321_v38 = vld [vmem:[%s2334_s16 + $0xe8] sm:$0xff] }
  0xa9   : > { %1659 = vmatpush1.bf16.msra.mxu1 %v2402_v47 }
  0xaa   : > { %793 = vmatpush1.bf16.msra.mxu0 %v1834_v40  ;;  %1644 = vmatprep.subr.bf16.mxu1 %v2405_v49  ;;  %v326_v40 = vld [vmem:[%s2334_s16 + $0x110] sm:$0xff] }
  0xab   : > { %794 = vmatprep.subr.bf16.mxu0 %v1837_v42  ;;  %v330_v42 = vld [vmem:[%s2334_s16 + $0x130] sm:$0xff] }
  0xad   : > { %1660 = vmatpush1.bf16.msra.mxu1 %v2410_v54 }
  0xae   : > { %795 = vmatpush1.bf16.msra.mxu0 %v1840_v44  ;;  %1645 = vmatprep.subr.bf16.mxu1 %v2413_v56 }
  0xaf   : > { %796 = vmatprep.subr.bf16.mxu0 %v1843_v46  ;;  %v339_v46 = vld [vmem:[%s2334_s16 + $0x178] sm:$0xff] }
  0xb1   : > { %1661 = vmatpush1.bf16.msra.mxu1 %v2416_v58 }
  0xb2   : > { %797 = vmatpush1.bf16.msra.mxu0 %v1846_v48  ;;  %1646 = vmatprep.subr.bf16.mxu1 %v2419_v60 }
  0xb3   : > { %798 = vmatprep.subr.bf16.mxu0 %v1849_v50  ;;  %v316_v50 = vld [vmem:[%s2334_s16 + $0xc0] sm:$0xff] }
  0xb4   : > { %v360_v53 = vpack.c.bf16 %v320_v51, %v316_v50  ;;  %v442_v50 = vlaneseq }
  0xb5   : > { %1662 = vmatpush1.bf16.msra.mxu1 %v2422_v63 }
  0xb6   : > { %799 = vmatpush1.bf16.msra.mxu0 %v1852_v55  ;;  %1647 = vmatprep.subr.bf16.mxu1 %v2427_v2  ;;  %v338_v55 = vld [vmem:[%s2334_s16 + $0x170] sm:$0xff] }
  0xb7   : > { %800 = vmatprep.subr.bf16.mxu0 %v1855_v57 }
  0xb9   : > { %1663 = vmatpush1.bf16.msra.mxu1 %v2431_v5 }
  0xba   : > { %801 = vmatpush1.bf16.msra.mxu0 %v1858_v59  ;;  %1648 = vmatprep.subr.bf16.mxu1 %v2434_v7  ;;  %v347_v59 = vld [vmem:[%s2334_s16 + $0x1b8] sm:$0xff] }
  0xbb   : > { %802 = vmatprep.subr.bf16.mxu0 %v1861_v61 }
  0xbd   : > { %1664 = vmatpush1.bf16.msra.mxu1 %v2438_v12 }
  0xbe   : > { %803 = vmatpush1.bf16.msra.mxu0 %v1864_v62  ;;  %1649 = vmatprep.subr.bf16.mxu1 %v2442_v19  ;;  %v324_v62 = vld [vmem:[%s2334_s16 + $0x100] sm:$0xff] }
  0xbf   : > { %875 = vmatprep.subr.bf16.mxu0 %v2344_v8  ;;  %v2450_v8 = vld [vmem:[#allocation5 + $0x1f0] ss:$8 sps:$4 sm:$0xff]   ;;  %v364_v3 = vpack.c.bf16 %v328_v0, %v324_v62 }
  0xc1   : > { %805 = vmatmul.mubr.bf16.vlgmr.msra.gmra.mrb[0].mxu0 %v348_v6  ;;  %1665 = vmatpush1.bf16.msra.mxu1 %v2450_v8 }
  0xc2   : > { %876 = vmatpush1.bf16.msra.mxu0 %v2346_v10  ;;  %814 = vmatprep.mubr.bf16.mxu0 %v353_v9  ;;  %v357_v10 = vpack.c.bf16 %v313_v23, %v309_v21  ;;  %v336_v9 = vld [vmem:[%s2334_s16 + $0x160] sm:$0xff]  ;;  %v299_v23 = vld [vmem:[%s2334_s16 + $0x38] sm:$0xff] }
  0xc3   : > { %877 = vmatprep.subr.bf16.mxu0 %v2350_v11  ;;  %v362_v11 = vpack.c.bf16 %v322_v27, %v318_v24  ;;  %v344_v21 = vld [vmem:[%s2334_s16 + $0x1a0] sm:$0xff]  ;;  %v311_v27 = vld [vmem:[%s2334_s16 + $0x98] sm:$0xff] }
  0xc5   : > { %938 = vmatmul.mubr.bf16.vlgmr.msra.gmra.mrb[0].mxu1 %v362_v11  ;;  %v1890_v11 = vld [vmem:[#allocation7] sm:$0xff]  }
  0xc6   : > { %878 = vmatpush1.bf16.msra.mxu0 %v2352_v14  ;;  %v317_v14 = vld [vmem:[%s2334_s16 + $0xc8] sm:$0xff]  ;;  %947 = vmatprep.mubr.bf16.mxu1 %v367_v33 }
  0xc7   : > { %879 = vmatprep.subr.bf16.mxu0 %v2355_v15  ;;  %v356_v15 = vpack.c.bf16 %v312_v36, %v308_v35  ;;  %v361_v44 = vpack.c.bf16 %v321_v38, %v317_v14  ;;  %v1891_v33 = vld [vmem:[#allocation7 + $0x48] sm:$0xff]   ;;  %v1893_v35 = vld [vmem:[#allocation7 + $0x50] sm:$0xff]   ;;  %v1895_v14 = vld [vmem:[#allocation7 + $0x58] sm:$0xff]  }
  0xc8   : > { %v1894_v36 = vld [vmem:[#allocation7 + $0x10] sm:$0xff]   ;;  %v1896_v38 = vld [vmem:[#allocation7 + $0x18] sm:$0xff]  }
  0xc9   : > { %815 = vmatmul.mubr.bf16.gmra.mrb[4].mxu0 %v352_v32 }
  0xca   : > { %880 = vmatpush1.bf16.msra.mxu0 %v2358_v17  ;;  %824 = vmatprep.mubr.bf16.mxu0 %v357_v10  ;;  %v335_v17 = vld [vmem:[%s2334_s16 + $0x158] sm:$0xff]  ;;  %v1889_v10 = vld [vmem:[#allocation7 + $0x40] sm:$0xff]  }
  0xcb   : > { %881 = vmatprep.subr.bf16.mxu0 %v2361_v18  ;;  %v366_v18 = vpack.c.bf16 %v330_v42, %v326_v40  ;;  %v371_v48 = vpack.c.bf16 %v339_v46, %v335_v17  ;;  %1576 = vmatprep.subr.bf16.mxu1 %v1889_v10  ;;  %v1898_v40 = vld [vmem:[#allocation7 + $0x20] sm:$0xff]   ;;  %v1899_v42 = vld [vmem:[#allocation7 + $0x68] sm:$0xff]   ;;  %v1901_v17 = vld [vmem:[#allocation7 + $0x70] sm:$0xff]  }
  0xcc   : > { %1577 = vmatpush3.bf16.msra.mxu1 %v1890_v11  ;;  %v1902_v46 = vld [vmem:[#allocation7 + $0x30] sm:$0xff]  }
  0xcd   : > { %948 = vmatmul.mubr.bf16.gmra.mrb[4].mxu1 %v366_v18  ;;  %1578 = vmatprep.subr.bf16.mxu1 %v1891_v33  ;;  %v1903_v18 = vld [vmem:[#allocation7 + $0x78] sm:$0xff]  }
  0xce   : > { %882 = vmatpush1.bf16.msra.mxu0 %v2364_v20  ;;  %v325_v20 = vld [vmem:[%s2334_s16 + $0x108] sm:$0xff]  ;;  %957 = vmatprep.mubr.bf16.mxu1 %v371_v48  ;;  %v1904_v48 = vld [vmem:[#allocation7 + $0x38] sm:$0xff]  }
  0xcf   : > { %883 = vmatprep.subr.bf16.mxu0 %v2367_v22  ;;  %v334_v22 = vld [vmem:[%s2334_s16 + $0x150] sm:$0xff]  ;;  %v365_v57 = vpack.c.bf16 %v329_v52, %v325_v20  ;;  %v443_v52 = vshrl.u32 %v442_v50, 7 }
  0xd1   : > { %825 = vmatmul.mubr.bf16.gmra.mrb[8].mxu0 %v356_v15  ;;  %v1897_v15 = vld [vmem:[#allocation7 + $0x60] sm:$0xff]  }
  0xd2   : > { %884 = vmatpush1.bf16.msra.mxu0 %v2370_v25  ;;  %834 = vmatprep.mubr.bf16.mxu0 %v361_v44  ;;  %v343_v25 = vld [vmem:[%s2334_s16 + $0x198] sm:$0xff]  ;;  %v1900_v44 = vld [vmem:[#allocation7 + $0x28] sm:$0xff]  }
  0xd3   : > { %885 = vmatprep.subr.bf16.mxu0 %v2373_v26  ;;  %v370_v26 = vpack.c.bf16 %v338_v55, %v334_v22  ;;  %v375_v61 = vpack.c.bf16 %v347_v59, %v343_v25  ;;  %v444_v55 = vsub.s32 0, %v443_v52  ;;  %v448_v25 = vsub.s32 1, %v443_v52 }
  0xd5   : > { %958 = vmatmul.mubr.bf16.gmra.mrb[8].mxu1 %v370_v26 }
  0xd6   : > { %886 = vmatpush1.bf16.msra.mxu0 %v2376_v28  ;;  %v333_v28 = vld [vmem:[%s2334_s16 + $0x148] sm:$0xff]  ;;  %967 = vmatprep.mubr.bf16.mxu1 %v375_v61 }
  0xd7   : > { %887 = vmatprep.subr.bf16.mxu0 %v2379_v30  ;;  %v342_v30 = vld [vmem:[%s2334_s16 + $0x190] sm:$0xff]  ;;  %v369_v6 = vpack.c.bf16 %v337_v1, %v333_v28 }
  0xd9   : > { %835 = vmatmul.mubr.bf16.gmra.mrb[12].mxu0 %v360_v53 }
  0xda   : > { %888 = vmatpush1.bf16.msra.mxu0 %v2384_v34  ;;  %844 = vmatprep.mubr.bf16.mxu0 %v365_v57  ;;  %v374_v34 = vpack.c.bf16 %v346_v4, %v342_v30  ;;  %v440_v57 = vld [vmem:[%s2682_s2] sm:$0x3] }
  0xdb   : > { %889 = vmatprep.subr.bf16.mxu0 %v2387_v37  ;;  %v332_v37 = vld [vmem:[%s2334_s16 + $0x140] sm:$0xff]  ;;  %v2531_v61 = vrot.slane %v440_v57, %v444_v55  ;;  %v2533_v0 = vrot.slane %v440_v57, %v448_v25 }
  0xdd   : > { %968 = vmatmul.mubr.bf16.gmra.mrb[12].mxu1 %v374_v34 }
  0xde   : > { %890 = vmatpush1.bf16.msra.mxu0 %v2390_v39  ;;  %v368_v39 = vpack.c.bf16 %v336_v9, %v332_v37 }
  0xdf   : > { %891 = vmatprep.subr.bf16.mxu0 %v2393_v41  ;;  %v373_v41 = vpack.c.bf16 %v345_v16, %v341_v13 }
  0xe1   : > { %845 = vmatmul.mubr.bf16.gmra.mrb[16].mxu0 %v364_v3 }
  0xe2   : > { %892 = vmatpush1.bf16.msra.mxu0 %v2396_v43  ;;  %854 = vmatprep.mubr.bf16.mxu0 %v369_v6  ;;  %v340_v43 = vld [vmem:[%s2334_s16 + $0x180] sm:$0xff] }
  0xe3   : > { %893 = vmatprep.subr.bf16.mxu0 %v2399_v45  ;;  %v295_v45 = vld [vmem:[%s2334_s16 + $0x18] sm:$0xff]  ;;  %v372_v24 = vpack.c.bf16 %v344_v21, %v340_v43 }
  0xe6   : > { %894 = vmatpush1.bf16.msra.mxu0 %v2402_v47  ;;  %v351_v47 = vpack.c.bf16 %v299_v23, %v295_v45 }
  0xe7   : > { %895 = vmatprep.subr.bf16.mxu0 %v2405_v49  ;;  %v294_v49 = vld [vmem:[%s2334_s16 + $0x10] sm:$0xff] }
  0xe9   : > { %855 = vmatmul.mubr.bf16.gmra.mrb[20].mxu0 %v368_v39 }
  0xea   : > { %896 = vmatpush1.bf16.msra.mxu0 %v2410_v54  ;;  %864 = vmatprep.mubr.bf16.mxu0 %v373_v41  ;;  %v298_v54 = vld [vmem:[%s2334_s16 + $0x30] sm:$0xff] }
  0xeb   : > { %897 = vmatprep.subr.bf16.mxu0 %v2413_v56  ;;  %v303_v56 = vld [vmem:[%s2334_s16 + $0x58] sm:$0xff] }
  0xee   : > { %898 = vmatpush1.bf16.msra.mxu0 %v2416_v58  ;;  %v307_v58 = vld [vmem:[%s2334_s16 + $0x78] sm:$0xff] }
  0xef   : > { %899 = vmatprep.subr.bf16.mxu0 %v2419_v60  ;;  %v350_v60 = vpack.c.bf16 %v298_v54, %v294_v49 }
  0xf1   : > { %865 = vmatmul.mubr.bf16.gmra.mrb[24].mxu0 %v372_v24 }
  0xf2   : > { %900 = vmatpush1.bf16.msra.mxu0 %v2422_v63  ;;  %907 = vmatprep.mubr.bf16.mxu0 %v351_v47  ;;  %v355_v63 = vpack.c.bf16 %v307_v58, %v303_v56 }
  0xf3   : > { %901 = vmatprep.subr.bf16.mxu0 %v2427_v2  ;;  %v302_v2 = vld [vmem:[%s2334_s16 + $0x50] sm:$0xff] }
  0xf6   : > { %902 = vmatpush1.bf16.msra.mxu0 %v2431_v5  ;;  %v306_v5 = vld [vmem:[%s2334_s16 + $0x70] sm:$0xff] }
  0xf7   : > { %903 = vmatprep.subr.bf16.mxu0 %v2434_v7  ;;  %v315_v7 = vld [vmem:[%s2334_s16 + $0xb8] sm:$0xff]  ;;  %v354_v29 = vpack.c.bf16 %v306_v5, %v302_v2 }
  0xfa   : > { %904 = vmatpush1.bf16.msra.mxu0 %v2438_v12  ;;  %v359_v12 = vpack.c.bf16 %v315_v7, %v311_v27 }
  0xfb   : > { %905 = vmatprep.subr.bf16.mxu0 %v2442_v19  ;;  %v314_v19 = vld [vmem:[%s2334_s16 + $0xb0] sm:$0xff] }
  0xfc   : > { %v358_v32 = vpack.c.bf16 %v314_v19, %v310_v31 }
  0xfe   : > { %906 = vmatpush1.bf16.msra.mxu0 %v2450_v8  ;;  %v1892_v8 = vld [vmem:[#allocation7 + $0x8] sm:$0xff]  }
  0xff   : > { %1579 = vmatpush3.bf16.msra.mxu1 %v1892_v8 }
 0x100   : > { %1580 = vmatprep.subr.bf16.mxu1 %v1893_v35 }
 0x101   : > { %908 = vmatmul.mubr.bf16.vlgmr.msra.gmra.mrb[0].mxu0 %v350_v60 }
 0x102   : > { %917 = vmatprep.mubr.bf16.mxu0 %v355_v63 }
 0x103   : > { %1581 = vmatpush3.bf16.msra.mxu1 %v1894_v36 }
 0x104   : > { %1582 = vmatprep.subr.bf16.mxu1 %v1895_v14 }
 0x107   : > { %1583 = vmatpush3.bf16.msra.mxu1 %v1896_v38 }
 0x108   : > { %1584 = vmatprep.subr.bf16.mxu1 %v1897_v15 }
 0x109   : > { %918 = vmatmul.mubr.bf16.gmra.mrb[4].mxu0 %v354_v29 }
 0x10a   : > { %927 = vmatprep.mubr.bf16.mxu0 %v359_v12 }
 0x10b   : > { %1585 = vmatpush3.bf16.msra.mxu1 %v1898_v40 }
 0x10c   : > { %1586 = vmatprep.subr.bf16.mxu1 %v1899_v42 }
 0x10f   : > { %1587 = vmatpush3.bf16.msra.mxu1 %v1900_v44 }
 0x110   : > { %1588 = vmatprep.subr.bf16.mxu1 %v1901_v17 }
 0x111   : > { %928 = vmatmul.mubr.bf16.gmra.mrb[8].mxu0 %v358_v32 }
 0x113   : > { %1589 = vmatpush3.bf16.msra.mxu1 %v1902_v46 }
 0x114   : > { %1590 = vmatprep.subr.bf16.mxu1 %v1903_v18 }
 0x117   : > { %1591 = vmatpush3.bf16.msra.mxu1 %v1904_v48 }
 0x198   : > { %v939_v51 = vpop.f32.mrb[0].mxu1 }
 0x199   : > { %v941_v20 = vpop.f32.mrb[1].mxu1 }
 0x19a   : > { %v943_v53 = vpop.f32.mrb[2].mxu1 }
 0x19b   : > { %v945_v22 = vpop.f32.mrb[3].mxu1 }
 0x1a0   : > { %v949_v59 = vpop.f32.mrb[4].mxu1 }
 0x1a1   : > { %v951_v26 = vpop.f32.mrb[5].mxu1 }
 0x1a2   : > { %v953_v62 = vpop.f32.mrb[6].mxu1 }
 0x1a3   : > { %v955_v28 = vpop.f32.mrb[7].mxu1 }
 0x1a8   : > { %v959_v13 = vpop.f32.mrb[8].mxu1 }
 0x1a9   : > { %v961_v41 = vpop.f32.mrb[9].mxu1 }
 0x1aa   : > { %v963_v45 = vpop.f32.mrb[10].mxu1 }
 0x1ab   : > { %v965_v47 = vpop.f32.mrb[11].mxu1 }
 0x1ac   : > { %v836_v1 = vpop.f32.mrb[12].mxu0 }
 0x1ad   : > { %v837_v3 = vadd.f32 %v836_v1, %v2531_v61  ;;  %v838_v30 = vpop.f32.mrb[13].mxu0 }
 0x1ae   : > { %v839_v4 = vadd.f32 %v838_v30, %v2533_v0  ;;  %v840_v6 = vpop.f32.mrb[14].mxu0 }
 0x1af   : > { %v841_v34 = vadd.f32 %v840_v6, %v2531_v61  ;;  %v940_v37 = vadd.f32 %v939_v51, %v837_v3  ;;  %v842_v9 = vpop.f32.mrb[15].mxu0 }
 0x1b0   : > { %v843_v16 = vadd.f32 %v842_v9, %v2533_v0  ;;  %v942_v39 = vadd.f32 %v941_v20, %v839_v4  ;;  %v969_v31 = vpop.f32.mrb[12].mxu1 }
 0x1b1   : > { %v990_v43 = vmax.f32 %v940_v37, 0.0  ;;  %v944_v21 = vadd.f32 %v943_v53, %v841_v34  ;;  %v971_v10 = vpop.f32.mrb[13].mxu1 }
 0x1b2   : > { %v991_v23 = vmax.f32 %v942_v39, 0.0  ;;  %v946_v24 = vadd.f32 %v945_v22, %v843_v16  ;;  %v973_v8 = vpop.f32.mrb[14].mxu1 }
 0x1b3   : > { %v992_v49 = vmax.f32 %v944_v21, 0.0  ;;  %v975_v14 = vpop.f32.mrb[15].mxu1 }
 0x1b4   : > { %v993_v54 = vmax.f32 %v946_v24, 0.0  ;;  %v846_v56 = vpop.f32.mrb[16].mxu0 }
 0x1b5   : > { %v2539_v58 = vpack.c.bf16 %v992_v49, %v990_v43  ;;  %v847_v60 = vadd.f32 %v846_v56, %v2531_v61  ;;  %v848_v63 = vpop.f32.mrb[17].mxu0 }
 0x1b6   : > { %v2542_v2 = vpack.c.bf16 %v993_v54, %v991_v23  ;;  %v849_v5 = vadd.f32 %v848_v63, %v2533_v0  ;;  %v850_v27 = vpop.f32.mrb[18].mxu0 }
 0x1b7   : > { %v851_v7 = vadd.f32 %v850_v27, %v2531_v61  ;;  %v950_v29 = vadd.f32 %v949_v59, %v847_v60  ;;  %v852_v12 = vpop.f32.mrb[19].mxu0 }
 0x1b8   : > { %v853_v19 = vadd.f32 %v852_v12, %v2533_v0  ;;  %v952_v32 = vadd.f32 %v951_v26, %v849_v5 }
 0x1b9   : > { %v994_v11 = vmax.f32 %v950_v29, 0.0  ;;  %v954_v33 = vadd.f32 %v953_v62, %v851_v7 }
 0x1ba   : > { %v995_v35 = vmax.f32 %v952_v32, 0.0  ;;  %v956_v36 = vadd.f32 %v955_v28, %v853_v19 }
 0x1bb   : > { %v996_v38 = vmax.f32 %v954_v33, 0.0 }
 0x1bc   : > { %v997_v15 = vmax.f32 %v956_v36, 0.0  ;;  %v856_v40 = vpop.f32.mrb[20].mxu0 }
 0x1bd   : > { %v2547_v42 = vpack.c.bf16 %v996_v38, %v994_v11  ;;  %v857_v44 = vadd.f32 %v856_v40, %v2531_v61  ;;  %v858_v17 = vpop.f32.mrb[21].mxu0 }
 0x1be   : > { %v2550_v46 = vpack.c.bf16 %v997_v15, %v995_v35  ;;  %v859_v18 = vadd.f32 %v858_v17, %v2533_v0  ;;  %v860_v48 = vpop.f32.mrb[22].mxu0 }
 0x1bf   : > { %v861_v50 = vadd.f32 %v860_v48, %v2531_v61  ;;  %v960_v51 = vadd.f32 %v959_v13, %v857_v44  ;;  %v862_v20 = vpop.f32.mrb[23].mxu0 }
 0x1c0   : > { %v863_v52 = vadd.f32 %v862_v20, %v2533_v0  ;;  %v962_v53 = vadd.f32 %v961_v41, %v859_v18 }
 0x1c1   : > { %v998_v22 = vmax.f32 %v960_v51, 0.0  ;;  %v964_v55 = vadd.f32 %v963_v45, %v861_v50 }
 0x1c2   : > { %v999_v57 = vmax.f32 %v962_v53, 0.0  ;;  %v966_v25 = vadd.f32 %v965_v47, %v863_v52 }
 0x1c3   : > { %v1000_v59 = vmax.f32 %v964_v55, 0.0 }
 0x1c4   : > { %v1001_v26 = vmax.f32 %v966_v25, 0.0  ;;  %v866_v62 = vpop.f32.mrb[24].mxu0 }
 0x1c5   : > { %v2555_v28 = vpack.c.bf16 %v1000_v59, %v998_v22  ;;  %v867_v1 = vadd.f32 %v866_v62, %v2531_v61  ;;  %v868_v3 = vpop.f32.mrb[25].mxu0 }
 0x1c6   : > { %v2558_v30 = vpack.c.bf16 %v1001_v26, %v999_v57  ;;  %v869_v4 = vadd.f32 %v868_v3, %v2533_v0  ;;  %v870_v6 = vpop.f32.mrb[26].mxu0 }
 0x1c7   : > { %v871_v34 = vadd.f32 %v870_v6, %v2531_v61  ;;  %v970_v37 = vadd.f32 %v969_v31, %v867_v1  ;;  %v872_v9 = vpop.f32.mrb[27].mxu0 }
 0x1c8   : > { %v873_v13 = vadd.f32 %v872_v9, %v2533_v0  ;;  %v972_v16 = vadd.f32 %v971_v10, %v869_v4 }
 0x1c9   : > { %v1002_v39 = vmax.f32 %v970_v37, 0.0  ;;  %v974_v41 = vadd.f32 %v973_v8, %v871_v34 }
 0x1ca   : > { %v1003_v43 = vmax.f32 %v972_v16, 0.0  ;;  %v976_v21 = vadd.f32 %v975_v14, %v873_v13 }
 0x1cb   : > { %v1004_v45 = vmax.f32 %v974_v41, 0.0 }
 0x1cc   : > { %v1005_v23 = vmax.f32 %v976_v21, 0.0 }
 0x1cd   : > { %v1018_v24 = vpack.c.bf16 %v1004_v45, %v1002_v39 }
 0x1ce   : > { %v1019_v47 = vpack.c.bf16 %v1005_v23, %v1003_v43 }
 0x1d4   : > { %v909_v49 = vpop.f32.mrb[0].mxu0 }
 0x1d5   : > { %v1666_v54 = vadd.f32 %v909_v49, %v2531_v61  ;;  %v911_v56 = vpop.f32.mrb[1].mxu0 }
 0x1d6   : > { %v1667_v60 = vadd.f32 %v911_v56, %v2533_v0  ;;  %v913_v63 = vpop.f32.mrb[2].mxu0 }
 0x1d7   : > { %v1668_v5 = vadd.f32 %v913_v63, %v2531_v61  ;;  %v915_v27 = vpop.f32.mrb[3].mxu0  ;;  %v978_v29 = vmax.f32 %v1666_v54, 0.0 }
 0x1d8   : > { %v1669_v7 = vadd.f32 %v915_v27, %v2533_v0  ;;  %v979_v31 = vmax.f32 %v1667_v60, 0.0 }
 0x1d9   : > { %v980_v12 = vmax.f32 %v1668_v5, 0.0 }
 0x1da   : > { %v981_v19 = vmax.f32 %v1669_v7, 0.0 }
 0x1db   : > { %v1006_v32 = vpack.c.bf16 %v980_v12, %v978_v29 }
 0x1dc   : > { %v1007_v10 = vpack.c.bf16 %v981_v19, %v979_v31  ;;  %v919_v11 = vpop.f32.mrb[4].mxu0 }
 0x1dd   : > { %v1670_v33 = vadd.f32 %v919_v11, %v2531_v61  ;;  %v921_v8 = vpop.f32.mrb[5].mxu0 }
 0x1de   : > { %v1671_v35 = vadd.f32 %v921_v8, %v2533_v0  ;;  %v923_v36 = vpop.f32.mrb[6].mxu0  ;;  %1187 = vmatprep.mubr.bf16.mxu1 %v1007_v10 }
 0x1df   : > { %v1672_v14 = vadd.f32 %v923_v36, %v2531_v61  ;;  %v925_v38 = vpop.f32.mrb[7].mxu0  ;;  %1188 = vmatmul.mubr.bf16.vlgmr.msra.gmra.mrb[16].mxu1 %v1006_v32  ;;  %v982_v40 = vmax.f32 %v1670_v33, 0.0 }
 0x1e0   : > { %v1673_v15 = vadd.f32 %v925_v38, %v2533_v0  ;;  %v983_v17 = vmax.f32 %v1671_v35, 0.0 }
 0x1e1   : > { %v984_v44 = vmax.f32 %v1672_v14, 0.0 }
 0x1e2   : > { %v985_v18 = vmax.f32 %v1673_v15, 0.0 }
 0x1e3   : > { %v1008_v48 = vpack.c.bf16 %v984_v44, %v982_v40 }
 0x1e4   : > { %v1009_v50 = vpack.c.bf16 %v985_v18, %v983_v17  ;;  %v929_v51 = vpop.f32.mrb[8].mxu0 }
 0x1e5   : > { %v1674_v20 = vadd.f32 %v929_v51, %v2531_v61  ;;  %v931_v52 = vpop.f32.mrb[9].mxu0 }
 0x1e6   : > { %v1675_v53 = vadd.f32 %v931_v52, %v2533_v0  ;;  %v933_v22 = vpop.f32.mrb[10].mxu0  ;;  %1195 = vmatprep.mubr.bf16.mxu1 %v1009_v50 }
 0x1e7   : > { %v1676_v55 = vadd.f32 %v933_v22, %v2531_v61  ;;  %v935_v57 = vpop.f32.mrb[11].mxu0  ;;  %1196 = vmatmul.mubr.bf16.gmra.mrb[20].mxu1 %v1008_v48  ;;  %v986_v59 = vmax.f32 %v1674_v20, 0.0 }
 0x1e8   : > { %v1677_v25 = vadd.f32 %v935_v57, %v2533_v0  ;;  %v987_v62 = vmax.f32 %v1675_v53, 0.0  ;;  %v2584_v0 = vld [vmem:[%s2684_s4] ss:$0 sm:$0xff] }
 0x1e9   : > { %v988_v26 = vmax.f32 %v1676_v55, 0.0 }
 0x1ea   : > { %v989_v1 = vmax.f32 %v1677_v25, 0.0 }
 0x1eb   : > { %v1010_v3 = vpack.c.bf16 %v988_v26, %v986_v59 }
 0x1ec   : > { %v1011_v4 = vpack.c.bf16 %v989_v1, %v987_v62 }
 0x1ee   : > { %1203 = vmatprep.mubr.bf16.mxu1 %v1011_v4 }
 0x1ef   : > { %1204 = vmatmul.mubr.bf16.gmra.mrb[24].mxu1 %v1010_v3 }
 0x1f0   : > { %1211 = vmatprep.mubr.bf16.mxu1 %v2542_v2 }
 0x1f7   : > { %1212 = vmatmul.mubr.bf16.gmra.mrb[28].mxu1 %v2539_v58 }
 0x1f8   : > { %1219 = vmatprep.mubr.bf16.mxu1 %v2550_v46 }
 0x1ff   : > { %1220 = vmatmul.mubr.bf16.gmra.mrb[32].mxu1 %v2547_v42 }
 0x200   : > { %1227 = vmatprep.mubr.bf16.mxu1 %v2558_v30 }
 0x207   : > { %1228 = vmatmul.mubr.bf16.gmra.mrb[36].mxu1 %v2555_v28 }
 0x208   : > { %1235 = vmatprep.mubr.bf16.mxu1 %v1019_v47 }
 0x20f   : > { %1236 = vmatmul.mubr.bf16.gmra.mrb[40].mxu1 %v1018_v24 }
 0x2b2   : > { %v1592_v61 = vpop.f32.mrb[16].mxu1 }
 0x2b3   : > { %v1593_v6 = vpop.f32.mrb[17].mxu1 }
 0x2b4   : > { %v1594_v2 = vadd.f32 %v1593_v6, %v1592_v61  ;;  %v1595_v34 = vpop.f32.mrb[18].mxu1 }
 0x2b5   : > { %v1596_v58 = vpop.f32.mrb[19].mxu1 }
 0x2b6   : > { %v1190_v46 = vadd.f32 %v1594_v2, %v2584_v0  ;;  %v1597_v37 = vadd.f32 %v1596_v58, %v1595_v34 }
 0x2b8   : > { %v1550_v42 = vmul.f32 -1.442695, %v1190_v46  ;;  %v1193_v30 = vadd.f32 %v1597_v37, %v2584_v0 }
 0x2ba   : > { %1905 = vpow2.f32 %v1550_v42  ;;  %v1551_v28 = vmul.f32 -1.442695, %v1193_v30  ;;  %v1598_v9 = vpop.f32.mrb[20].mxu1 }
 0x2bb   : > { %v1599_v13 = vpop.f32.mrb[21].mxu1 }
 0x2bc   : > { %1907 = vpow2.f32 %v1551_v28  ;;  %v1600_v16 = vadd.f32 %v1599_v13, %v1598_v9  ;;  %v1601_v39 = vpop.f32.mrb[22].mxu1 }
 0x2bd   : > { %v1602_v41 = vpop.f32.mrb[23].mxu1 }
 0x2be   : > { %v1198_v43 = vadd.f32 %v1600_v16, %v2584_v0  ;;  %v1603_v21 = vadd.f32 %v1602_v41, %v1601_v39 }
 0x2c0   : > { %v1552_v45 = vmul.f32 -1.442695, %v1198_v43  ;;  %v1201_v23 = vadd.f32 %v1603_v21, %v2584_v0 }
 0x2c2   : > { %1909 = vpow2.f32 %v1552_v45  ;;  %v1553_v24 = vmul.f32 -1.442695, %v1201_v23  ;;  %v1604_v47 = vpop.f32.mrb[24].mxu1 }
 0x2c3   : > { %v1605_v49 = vpop.f32.mrb[25].mxu1 }
 0x2c4   : > { %v1906_v54 = vpop.eup %1905  ;;  %1911 = vpow2.f32 %v1553_v24  ;;  %v1606_v56 = vadd.f32 %v1605_v49, %v1604_v47  ;;  %v1607_v60 = vpop.f32.mrb[26].mxu1 }
 0x2c5   : > { %v1286_v63 = vadd.f32 1.0, %v1906_v54  ;;  %v1608_v5 = vpop.f32.mrb[27].mxu1 }
 0x2c6   : > { %v1908_v27 = vpop.eup %1907  ;;  %v1206_v7 = vadd.f32 %v1606_v56, %v2584_v0  ;;  %v1609_v29 = vadd.f32 %v1608_v5, %v1607_v60 }
 0x2c7   : > { %1913 = vrcp.f32 %v1286_v63  ;;  %v1287_v12 = vadd.f32 1.0, %v1908_v27 }
 0x2c8   : > { %v1554_v31 = vmul.f32 -1.442695, %v1206_v7  ;;  %v1209_v19 = vadd.f32 %v1609_v29, %v2584_v0 }
 0x2c9   : > { %1915 = vrcp.f32 %v1287_v12 }
 0x2ca   : > { %1917 = vpow2.f32 %v1554_v31  ;;  %v1555_v32 = vmul.f32 -1.442695, %v1209_v19  ;;  %v1610_v10 = vpop.f32.mrb[28].mxu1 }
 0x2cb   : > { %v1611_v11 = vpop.f32.mrb[29].mxu1 }
 0x2cc   : > { %v1910_v33 = vpop.eup %1909  ;;  %1919 = vpow2.f32 %v1555_v32  ;;  %v1612_v8 = vadd.f32 %v1611_v11, %v1610_v10  ;;  %v1613_v35 = vpop.f32.mrb[30].mxu1 }
 0x2cd   : > { %v1288_v36 = vadd.f32 1.0, %v1910_v33  ;;  %v1614_v14 = vpop.f32.mrb[31].mxu1 }
 0x2ce   : > { %v1912_v38 = vpop.eup %1911  ;;  %v1214_v15 = vadd.f32 %v1612_v8, %v2584_v0  ;;  %v1615_v40 = vadd.f32 %v1614_v14, %v1613_v35 }
 0x2cf   : > { %1921 = vrcp.f32 %v1288_v36  ;;  %v1289_v44 = vadd.f32 1.0, %v1912_v38 }
 0x2d0   : > { %v1556_v17 = vmul.f32 -1.442695, %v1214_v15  ;;  %v1217_v18 = vadd.f32 %v1615_v40, %v2584_v0 }
 0x2d1   : > { %v1914_v48 = vpop.eup %1913  ;;  %1923 = vrcp.f32 %v1289_v44 }
 0x2d2   : > { %1328 = vst [vmem:[%s2595_s8] sm:$0xff] %v1914_v48  ;;  %1925 = vpow2.f32 %v1556_v17  ;;  %v1557_v50 = vmul.f32 -1.442695, %v1217_v18  ;;  %v1616_v51 = vpop.f32.mrb[32].mxu1 }
 0x2d3   : > { %v1916_v20 = vpop.eup %1915  ;;  %v1617_v52 = vpop.f32.mrb[33].mxu1 }
 0x2d4   : > { %v1918_v53 = vpop.eup %1917  ;;  %1329 = vst [vmem:[%s2595_s8 + $0x8] sm:$0xff] %v1916_v20  ;;  %1927 = vpow2.f32 %v1557_v50  ;;  %v1618_v22 = vadd.f32 %v1617_v52, %v1616_v51  ;;  %v1619_v55 = vpop.f32.mrb[34].mxu1 }
 0x2d5   : > { %v1290_v57 = vadd.f32 1.0, %v1918_v53  ;;  %v1620_v25 = vpop.f32.mrb[35].mxu1 }
 0x2d6   : > { %v1920_v59 = vpop.eup %1919  ;;  %v1222_v26 = vadd.f32 %v1618_v22, %v2584_v0  ;;  %v1621_v62 = vadd.f32 %v1620_v25, %v1619_v55 }
 0x2d7   : > { %1929 = vrcp.f32 %v1290_v57  ;;  %v1291_v1 = vadd.f32 1.0, %v1920_v59 }
 0x2d8   : > { %v1558_v3 = vmul.f32 -1.442695, %v1222_v26  ;;  %v1225_v4 = vadd.f32 %v1621_v62, %v2584_v0 }
 0x2d9   : > { %v1922_v61 = vpop.eup %1921  ;;  %1931 = vrcp.f32 %v1291_v1 }
 0x2da   : > { %1330 = vst [vmem:[%s2595_s8 + $0x10] sm:$0xff] %v1922_v61  ;;  %1933 = vpow2.f32 %v1558_v3  ;;  %v1559_v6 = vmul.f32 -1.442695, %v1225_v4  ;;  %v1622_v2 = vpop.f32.mrb[36].mxu1 }
 0x2db   : > { %v1924_v34 = vpop.eup %1923  ;;  %v1623_v58 = vpop.f32.mrb[37].mxu1 }
 0x2dc   : > { %v1926_v46 = vpop.eup %1925  ;;  %1331 = vst [vmem:[%s2595_s8 + $0x18] sm:$0xff] %v1924_v34  ;;  %1935 = vpow2.f32 %v1559_v6  ;;  %v1624_v37 = vadd.f32 %v1623_v58, %v1622_v2  ;;  %v1625_v42 = vpop.f32.mrb[38].mxu1 }
 0x2dd   : > { %v1292_v30 = vadd.f32 1.0, %v1926_v46  ;;  %v1626_v28 = vpop.f32.mrb[39].mxu1 }
 0x2de   : > { %v1928_v9 = vpop.eup %1927  ;;  %v1230_v13 = vadd.f32 %v1624_v37, %v2584_v0  ;;  %v1627_v16 = vadd.f32 %v1626_v28, %v1625_v42 }
 0x2df   : > { %1937 = vrcp.f32 %v1292_v30  ;;  %v1293_v39 = vadd.f32 1.0, %v1928_v9 }
 0x2e0   : > { %v1560_v41 = vmul.f32 -1.442695, %v1230_v13  ;;  %v1233_v43 = vadd.f32 %v1627_v16, %v2584_v0 }
 0x2e1   : > { %v1930_v21 = vpop.eup %1929  ;;  %1939 = vrcp.f32 %v1293_v39 }
 0x2e2   : > { %1332 = vst [vmem:[%s2595_s8 + $0x20] sm:$0xff] %v1930_v21  ;;  %1941 = vpow2.f32 %v1560_v41  ;;  %v1561_v45 = vmul.f32 -1.442695, %v1233_v43  ;;  %v1628_v23 = vpop.f32.mrb[40].mxu1 }
 0x2e3   : > { %v1932_v24 = vpop.eup %1931  ;;  %v1629_v47 = vpop.f32.mrb[41].mxu1 }
 0x2e4   : > { %v1934_v49 = vpop.eup %1933  ;;  %1333 = vst [vmem:[%s2595_s8 + $0x28] sm:$0xff] %v1932_v24  ;;  %1943 = vpow2.f32 %v1561_v45  ;;  %v1630_v54 = vadd.f32 %v1629_v47, %v1628_v23  ;;  %v1631_v56 = vpop.f32.mrb[42].mxu1 }
 0x2e5   : > { %v1294_v60 = vadd.f32 1.0, %v1934_v49  ;;  %v1632_v63 = vpop.f32.mrb[43].mxu1 }
 0x2e6   : > { %v1936_v5 = vpop.eup %1935  ;;  %v1238_v27 = vadd.f32 %v1630_v54, %v2584_v0  ;;  %v1633_v7 = vadd.f32 %v1632_v63, %v1631_v56 }
 0x2e7   : > { %1945 = vrcp.f32 %v1294_v60  ;;  %v1295_v29 = vadd.f32 1.0, %v1936_v5 }
 0x2e8   : > { %v1562_v12 = vmul.f32 -1.442695, %v1238_v27  ;;  %v1241_v31 = vadd.f32 %v1633_v7, %v2584_v0 }
 0x2e9   : > { %v1938_v19 = vpop.eup %1937  ;;  %1947 = vrcp.f32 %v1295_v29 }
 0x2ea   : > { %1334 = vst [vmem:[%s2595_s8 + $0x30] sm:$0xff] %v1938_v19  ;;  %1949 = vpow2.f32 %v1562_v12  ;;  %v1563_v32 = vmul.f32 -1.442695, %v1241_v31 }
 0x2eb   : > { %v1940_v10 = vpop.eup %1939 }
 0x2ec   : > { %v1942_v11 = vpop.eup %1941  ;;  %1335 = vst [vmem:[%s2595_s8 + $0x38] sm:$0xff] %v1940_v10  ;;  %1951 = vpow2.f32 %v1563_v32 }
 0x2ed   : > { %v1296_v33 = vadd.f32 1.0, %v1942_v11 }
 0x2ee   : > { %v1944_v8 = vpop.eup %1943 }
 0x2ef   : > { %1953 = vrcp.f32 %v1296_v33  ;;  %v1297_v35 = vadd.f32 1.0, %v1944_v8 }
 0x2f1   : > { %v1946_v36 = vpop.eup %1945  ;;  %1955 = vrcp.f32 %v1297_v35 }
 0x2f2   : > { %1336 = vst [vmem:[%s2595_s8 + $0x40] sm:$0xff] %v1946_v36 }
 0x2f3   : > { %v1948_v0 = vpop.eup %1947 }
 0x2f4   : > { %v1950_v14 = vpop.eup %1949  ;;  %1337 = vst [vmem:[%s2595_s8 + $0x48] sm:$0xff] %v1948_v0 }
 0x2f5   : > { %v1298_v38 = vadd.f32 1.0, %v1950_v14 }
 0x2f6   : > { %v1952_v15 = vpop.eup %1951 }
 0x2f7   : > { %1957 = vrcp.f32 %v1298_v38  ;;  %v1299_v40 = vadd.f32 1.0, %v1952_v15 }
 0x2f9   : > { %v1954_v44 = vpop.eup %1953  ;;  %1959 = vrcp.f32 %v1299_v40 }
 0x2fa   : > { %1338 = vst [vmem:[%s2595_s8 + $0x50] sm:$0xff] %v1954_v44 }
 0x2fb   : > { %v1956_v17 = vpop.eup %1955 }
 0x2fc   : > { %1339 = vst [vmem:[%s2595_s8 + $0x58] sm:$0xff] %v1956_v17 }
 0x2fe   : > { %1349 = sbr.rel (!%p2701_p9) target bundleno = 801 (0x321), region = 56 }
 0x301   : > { %v1958_v18 = vpop.eup %1957 }
 0x302   : > { %1340 = vst [vmem:[%s2595_s8 + $0x60] sm:$0xff] %v1958_v18 }
 0x303   : > { %v1960_v48 = vpop.eup %1959 }
 0x304   : > { %1341 = vst [vmem:[%s2595_s8 + $0x68] sm:$0xff] %v1960_v48 }
 0x305   : > { %s2711_s25 = smov (!%p1352_p10, %s1351_s25), 14 }
 0x306   : > { %s2621_s28 = sshll.u32 %s2711_s25, 7 }
 0x307   : > { %s1356_s9 = ssub.s32 1792, %s2621_s28 }
 0x308   : > { %1357 = vsyncadd %s1343_s17, %s1356_s9  ;;  %p1565_p1 = scmp.ne.s32.totalorder %s2621_s28, 0  ;;  %s1574_s30 = smul.u32 1792, %s2180_s22 }
 0x309   : > { %s1362_s27 = sshll.u32 %s2595_s8, 4  ;;  %s2126_s29 = smov [#allocation8]   ;;  %s2634_s27 = int_to_ptr.vmem [resolvable:$true] %s1362_s27 }
 0x30a   : > { %s2632_s15 = scalar_lea.hbm %s2685_s5, %s1574_s30  ;;  %s2045_s16 = scalar_lea.vmem %s2634_s27, %s2621_s28 }
 0x30b   : > { %p2046_p3 = scmp.ne.s32.totalorder %s2634_s27, %s2045_s16  ;;  %s2049_s7 = sshll.u32 %s2126_s29, 4  ;;  %s2050_s7 = int_to_ptr.vmem [resolvable:$false] %s2049_s7 }
 0x30c   : > { %s2051_s22 = scalar_lea.vmem %s2050_s7, 3584  ;;  %p2052_p11 = scmp.lt.s32.totalorder %s2634_s27, %s2050_s7 }
 0x30d   : > { %p2047_p5 = pnand %p2046_p3, %p1565_p1  ;;  %p2053_p13 = scmp.lt.s32.totalorder %s2051_s22, %s2045_s16 }
 0x30f   : > { %p2048_p6 = pneg %p2047_p5  ;;  %p2054_p0 = por %p2053_p13, %p2052_p11 }
 0x311   : > { %p2055_p12 = pnand %p2054_p0, %p2048_p6 }
 0x313   : > { %2058 = shalt.err (!%p2055_p12)
}
 0x314   : > { %s2059_s10 = scalar_lea.hbm %s2632_s15, %s2621_s28  ;;  %s2063_s8 = scalar_lea.hbm %s2685_s5, 3200 }
 0x315   : > { %p2060_p7 = scmp.ne.s32.totalorder %s2632_s15, %s2059_s10  ;;  %p2064_p9 = scmp.lt.u32.totalorder %s2632_s15, %s2685_s5 }
 0x316   : > { %p2065_p10 = scmp.lt.u32.totalorder %s2063_s8, %s2059_s10  ;;  %p2067_p5 = scmp.lt.u32.totalorder %s2059_s10, %s2632_s15 }
 0x317   : > { %p2061_p2 = pnand %p2060_p7, %p1565_p1 }
 0x318   : > { %p2066_p3 = por %p2065_p10, %p2064_p9 }
 0x319   : > { %p2062_p8 = pneg %p2061_p2 }
 0x31a   : > { %p2068_p6 = por %p2067_p5, %p2066_p3 }
 0x31c   : > { %p2069_p11 = pnand %p2068_p6, %p2062_p8 }
 0x31e   : > { %2072 = shalt.err (!%p2069_p11)
}
 0x31f   : > { %s2127_s9 = smov 128   ;;  %s2128_s30 = smov 8  }
 0x320   : > { %1368 = dma.vmem_to_hbm [thread:$0]  (%p1565_p1), %s2634_s27, %s2621_s28, %s2632_s15, %s1343_s17, %s2127_s9, %s2127_s9, %s2128_s30  }
 0x321 PF: > { %s1377_s11 = sand.u32 1, %s2103_s18   ;;  %p2702_p13 = scmp.ne.s32.totalorder %s2693_s6, 0 }
 0x322   : > { %s1378_s14 = scalar_lea.sflag [#allocation4], %s1377_s11 }
 0x323   : > { %p1743_p0 = pnand %p1458_p4, %p2702_p13 }
 0x325   : > { %2098 = dma.done.wait (!%p1743_p0), %s1378_s14, 1792  }
 0x326   : > { %2100 = vsyncadd (!%p1743_p0), %s1378_s14, 4294965504  ;;  %s2703_s16 = sld [smem:[#allocation12_spill]]  ;;  %p19_p12 = scmp.ge.s32.totalorder %s2184_s24, 4  }
 0x327   : > { %s2704_s18 = smov %s2107_s19  ;;  %s2705_s19 = smov %s2111_s20 }
 0x328   : > { %s2707_s21 = smov %s2184_s24  ;;  %21 = sbr.rel (!%p19_p12) target bundleno = 6 (0x6), region = 93 }
 0x32c   : > { %s2706_s20 = smov %s2703_s16 }
 0x32f   :  { %1383 = vsyncpa [#allocation3], 1 }
 0x330   :  { %1385 = vsyncpa [#allocation3 + $0x1], 1 }
 0x331   :  { %1386 = vsyncpa [#allocation6], 1 }
 0x332   :  { %1387 = vsyncpa [#allocation4], 1 }
 0x333   :  { %1389 = vsyncpa [#allocation4 + $0x1], 1 }

</bundles_post_ra>
